<compile_context>
chip_gen: v7x
topology: tpu7x:2x2x1
jax: 0.10.0
libtpu: 0.0.40
codegen_flags: <defaults>
</compile_context>

<pallas_src>
import jax
import jax.numpy as jnp
import numpy as np
from jax.experimental import pallas as pl
from jax.experimental.pallas import tpu as pltpu


# --------------------------------------------------------------------------
# Kernel
# --------------------------------------------------------------------------
def _make_kernel(chunk):
    """Build the compositing kernel for a given static row-chunk size."""

    def kernel(disp_sm, alpha_ref, out_ref):
        # disp_sm  : (B, D) f32 in SMEM  (scalar-prefetched per-plane disparities)
        # alpha_ref: (D-1, tile_r, lanes) near-plane alpha tile in VMEM
        #            (the farthest plane is never read -> not DMA'd at all)
        # out_ref  : (tile_r, lanes)      composited disparity tile
        b = pl.program_id(0)
        nplanes = alpha_ref.shape[0]              # == D - 1
        tile_r, lanes = out_ref.shape

        disp_far = disp_sm[b, nplanes]            # farthest plane disparity
        disp_near = [disp_sm[b, d] for d in range(nplanes)]

        nchunks = tile_r // chunk                 # chunk divides tile_r by construction
        # hoist the scalar splat out of the loop (JAX does not CSE broadcasts)
        acc0 = jnp.full((chunk, lanes), disp_far, dtype=jnp.float32)

        def body(i, carry):
            r0 = pl.multiple_of(i * chunk, chunk)
            acc = acc0                            # vreg-resident across planes
            # back-to-front over-composite, statically unrolled over planes.
            # 3-op update: acc += a * (disp - acc)  == disp*a + (1-a)*acc
            for d in range(nplanes - 1, -1, -1):
                a = alpha_ref[d, pl.ds(r0, chunk), :].astype(jnp.float32)
                acc = acc + a * (disp_near[d] - acc)
            out_ref[pl.ds(r0, chunk), :] = acc.astype(out_ref.dtype)
            return carry

        jax.lax.fori_loop(0, nchunks, body, 0)

    return kernel


# --------------------------------------------------------------------------
# Layout / tiling helpers
# --------------------------------------------------------------------------
def _round_up(x, m):
    return ((x + m - 1) // m) * m


def _flat_layout(C, H, W):
    """Factor S = C*H*W into (rows, lanes) with a lane-dense last axis
    (multiple of 128) whenever the reshape is free (row-major contiguous)."""
    S = C * H * W
    if S % 128 == 0:
        for lanes in (1024, 512, 256, 128):       # prefer wide lanes, keep >=8 rows
            if S % lanes == 0 and S // lanes >= 8:
                return S // lanes, lanes
        return S // 128, 128                      # very small spatial extents
    # Cannot build a 128-multiple lane axis for free; keep the natural layout.
    # Correct, but stores are lane-masked when W % 128 != 0.
    # TODO(synk): optionally pad W to a multiple of 128 (one extra HBM copy)
    # if masked stores ever dominate for such shapes.
    return C * H, W


def _vmem_limit_bytes():
    """Generation-aware scoped-VMEM limit.  Capped at 48 MiB so the same
    tiling also fits v7x's 64 MiB/TC physical VMEM with headroom; explicitly
    setting it keeps v5e (16 MiB default scoped VMEM) from shrinking tiles."""
    cap = 64 * 1024 * 1024                        # v7x floor: safest assumption
    try:
        cap = int(pltpu.get_tpu_info().vmem_capacity_bytes)
    except Exception:
        pass
    return int(min((cap * 3) // 4, 48 * 1024 * 1024))


def _pick_tile_rows(rows, n_planes_read, lanes, abytes, obytes, budget_bytes, batch):
    """Largest multiple-of-8 row tile whose double-buffered working set
    (n_planes_read alpha planes in + 1 output tile out) fits the budget."""
    if rows <= 8:
        return rows                               # full extent (tiny problem)
    per_row = 2 * (n_planes_read * abytes + obytes) * lanes   # x2: double-buffered
    t = max(8, (budget_bytes // per_row) // 8 * 8)
    t = min(t, _round_up(rows, 8))
    if batch == 1:
        # v7x has two TensorCores: guarantee >= 2 parallel grid programs.
        t = min(t, max(8, ((rows - 1) // 8) * 8))
    return t


def _pick_chunk(tile_r, lanes):
    """Row chunk for the in-kernel strip-mined plane loop: small enough that
    the f32 accumulator (~<= 8 vregs) stays vreg-resident across all planes."""
    if tile_r <= 8 or tile_r % 8 != 0:
        return tile_r
    c = (32 * 1024) // (4 * lanes)                # ~32 KiB of f32 accumulator
    c = max(8, min(tile_r, (c // 8) * 8))
    while tile_r % c:
        c -= 8
    return c


# --------------------------------------------------------------------------
# Public wrapper
# --------------------------------------------------------------------------
def alpha2disp(alpha, k_mat, baseline, depth_proposals, t_vec=None,
               novel_view=False):
    """Pallas port of Alpha2Disp.forward.

    alpha           : (B, D, C, H, W) float (f32 or bf16; f32 accumulation inside)
    k_mat           : (B, 3, 3) intrinsics, k_mat[:, 0, 0] is focal fx
    baseline        : scalar
    depth_proposals : (D,) = 1 / linspace(1/near, 1/far, D)
    t_vec           : (B, 3, 1) translation (only used if novel_view)
    returns         : (B, C, H, W)
    """
    B, D, C, H, W = alpha.shape

    # --- cheap glue in plain JAX: per-(batch, plane) disparity scalars ------
    if novel_view:
        z_shift = t_vec[:, 2, :].reshape(B, 1).astype(jnp.float32)
    else:
        z_shift = jnp.zeros((B, 1), dtype=jnp.float32)
    depth = depth_proposals.reshape(1, D).astype(jnp.float32) + z_shift   # (B, D)
    fx = k_mat[:, 0, 0].reshape(B, 1).astype(jnp.float32)                 # (B, 1)
    disp = (baseline * fx) / depth                                        # (B, D) -> SMEM

    if D == 1:
        # Degenerate MPI: output is the single plane's disparity everywhere.
        return jnp.broadcast_to(disp.reshape(B, 1, 1, 1),
                                (B, C, H, W)).astype(alpha.dtype)

    # --- layout: flatten spatial dims, lane-dense last axis when possible ---
    rows, lanes = _flat_layout(C, H, W)
    alpha_r = alpha.reshape(B, D, rows, lanes)    # free (row-major contiguous)

    abytes = jnp.dtype(alpha.dtype).itemsize
    limit = _vmem_limit_bytes()
    budget = max(limit - 8 * 1024 * 1024, 8 * 1024 * 1024)
    tile_r = _pick_tile_rows(rows, D - 1, lanes, abytes, abytes, budget, B)
    chunk = _pick_chunk(tile_r, lanes)
    grid = (B, pl.cdiv(rows, tile_r))

    out = pl.pallas_call(
        _make_kernel(chunk),
        out_shape=jax.ShapeDtypeStruct((B, rows, lanes), alpha.dtype),
        grid_spec=pltpu.PrefetchScalarGridSpec(
            num_scalar_prefetch=1,                # disp (B, D) -> SMEM
            grid=grid,
            in_specs=[
                # Only the D-1 near planes are ever read (the farthest plane
                # contributes just its scalar disparity) -> skip 1/D of DMA.
                pl.BlockSpec((None, D - 1, tile_r, lanes),
                             lambda b, r, disp_sm: (b, 0, r, 0)),
            ],
            out_specs=pl.BlockSpec((None, tile_r, lanes),
                                   lambda b, r, disp_sm: (b, r, 0)),
        ),
        compiler_params=pltpu.CompilerParams(
            dimension_semantics=("parallel", "parallel"),
            vmem_limit_bytes=limit),
    )(disp, alpha_r)

    return out.reshape(B, C, H, W)


# --------------------------------------------------------------------------
# Pure-JAX reference (matches the PyTorch forward exactly)
# --------------------------------------------------------------------------
def _reference(alpha, k_mat, baseline, depth_proposals, t_vec=None,
               novel_view=False):
    B, D, C, H, W = alpha.shape
    if novel_view:
        z_shift = t_vec[:, 2, :].reshape(B, 1)
    else:
        z_shift = jnp.zeros((B, 1), jnp.float32)
    depth = depth_proposals.reshape(1, D) + z_shift                        # (B, D)
    fx = k_mat[:, 0, 0].reshape(B, 1, 1, 1, 1)
    disp = [baseline * fx / depth[:, d].reshape(B, 1, 1, 1, 1) for d in range(D)]
    disp_map = disp[-1]
    for d in reversed(range(D - 1)):
        a = alpha[:, d:d + 1]
        disp_map = disp[d] * a + (1.0 - a) * disp_map
    return disp_map.squeeze(1)


if __name__ == "__main__":
    # opts: near_plane=1.0, far_plane=100.0, num_planes=8
    near_plane, far_plane, num_planes = 1.0, 100.0, 8
    B, D, C, H, W = 2, num_planes, 1, 16, 128

    key = jax.random.PRNGKey(0)
    k_a, k_t, k_a2 = jax.random.split(key, 3)

    alpha = jax.random.uniform(k_a, (B, D, C, H, W), dtype=jnp.float32)
    kmat_base = jnp.array([[50.0, 0.0, 64.0],
                           [0.0, 50.0, 64.0],
                           [0.0, 0.0, 1.0]], dtype=jnp.float32)
    k_mat = jnp.broadcast_to(kmat_base, (B, 3, 3))
    baseline = 0.54
    t_vec = 0.1 * jax.random.normal(k_t, (B, 3, 1), dtype=jnp.float32)
    depth_proposals = 1.0 / jnp.linspace(1.0 / near_plane, 1.0 / far_plane,
                                         num_planes)

    # 1) input-view (novel_view=False)
    out = alpha2disp(alpha, k_mat, baseline, depth_proposals)
    jax.block_until_ready(out)
    ref = _reference(alpha, k_mat, baseline, depth_proposals)
    np.testing.assert_allclose(np.asarray(out), np.asarray(ref),
                               rtol=1e-5, atol=1e-5)

    # 2) novel-view path (uses t_vec z shift)
    out_nv = alpha2disp(alpha, k_mat, baseline, depth_proposals,
                        t_vec=t_vec, novel_view=True)
    jax.block_until_ready(out_nv)
    ref_nv = _reference(alpha, k_mat, baseline, depth_proposals,
                        t_vec=t_vec, novel_view=True)
    np.testing.assert_allclose(np.asarray(out_nv), np.asarray(ref_nv),
                               rtol=1e-5, atol=1e-5)

    # 3) odd, non-128-multiple spatial shape + batch 1 (exercises the
    #    natural-layout fallback, padded boundary row blocks, and the
    #    >=2-parallel-programs split for v7x's two TensorCores).
    B2, C2, H2, W2 = 1, 3, 5, 96
    alpha2 = jax.random.uniform(k_a2, (B2, D, C2, H2, W2), dtype=jnp.float32)
    k_mat2 = jnp.broadcast_to(kmat_base, (B2, 3, 3))
    out2 = alpha2disp(alpha2, k_mat2, baseline, depth_proposals)
    jax.block_until_ready(out2)
    ref2 = _reference(alpha2, k_mat2, baseline, depth_proposals)
    np.testing.assert_allclose(np.asarray(out2), np.asarray(ref2),
                               rtol=1e-5, atol=1e-5)

    print("KERNEL_OK")
</pallas_src>

<mosaic_0001>
module attributes {stable_mosaic.version = 11 : i64} {
  func.func @kernel(%arg0: i32, %arg1: i32, %arg2: memref<2x8xf32, #tpu.memory_space<smem>>, %arg3: memref<1x7x8x256xf32, #tpu.memory_space<vmem>>, %arg4: memref<1x8x256xf32, #tpu.memory_space<vmem>>) attributes {dimension_semantics = [#tpu.dimension_semantics<parallel>, #tpu.dimension_semantics<parallel>], iteration_bounds = array<i64: 2, 1>, scalar_prefetch = 1 : i64, scratch_operands = 0 : i64, tpu.core_type = #tpu.core_type<tc>, window_params = [{transform_indices = @transform_0, window_bounds = array<i64: 1, 7, 8, 256>}, {transform_indices = @transform_1, window_bounds = array<i64: 1, 8, 256>}]} {
    %0 = arith.index_cast %arg0 : i32 to index
    %c7 = arith.constant 7 : index
    %1 = memref.load %arg2[%0, %c7] : memref<2x8xf32, #tpu.memory_space<smem>>
    %2 = arith.index_cast %arg0 : i32 to index
    %c0 = arith.constant 0 : index
    %3 = memref.load %arg2[%2, %c0] : memref<2x8xf32, #tpu.memory_space<smem>>
    %4 = arith.index_cast %arg0 : i32 to index
    %c1 = arith.constant 1 : index
    %5 = memref.load %arg2[%4, %c1] : memref<2x8xf32, #tpu.memory_space<smem>>
    %6 = arith.index_cast %arg0 : i32 to index
    %c2 = arith.constant 2 : index
    %7 = memref.load %arg2[%6, %c2] : memref<2x8xf32, #tpu.memory_space<smem>>
    %8 = arith.index_cast %arg0 : i32 to index
    %c3 = arith.constant 3 : index
    %9 = memref.load %arg2[%8, %c3] : memref<2x8xf32, #tpu.memory_space<smem>>
    %10 = arith.index_cast %arg0 : i32 to index
    %c4 = arith.constant 4 : index
    %11 = memref.load %arg2[%10, %c4] : memref<2x8xf32, #tpu.memory_space<smem>>
    %12 = arith.index_cast %arg0 : i32 to index
    %c5 = arith.constant 5 : index
    %13 = memref.load %arg2[%12, %c5] : memref<2x8xf32, #tpu.memory_space<smem>>
    %14 = arith.index_cast %arg0 : i32 to index
    %c6 = arith.constant 6 : index
    %15 = memref.load %arg2[%14, %c6] : memref<2x8xf32, #tpu.memory_space<smem>>
    %16 = vector.broadcast %1 : f32 to vector<8x256xf32>
    %c0_i32 = arith.constant 0 : i32
    %c8_i32 = arith.constant 8 : i32
    %17 = arith.muli %c0_i32, %c8_i32 : i32
    %18 = tpu.assume_multiple %17, 8 : i32
    %c0_0 = arith.constant 0 : index
    %c6_1 = arith.constant 6 : index
    %19 = arith.index_cast %18 : i32 to index
    %c0_2 = arith.constant 0 : index
    %20 = vector.load %arg3[%c0_0, %c6_1, %19, %c0_2] : memref<1x7x8x256xf32, #tpu.memory_space<vmem>>, vector<1x1x8x256xf32>
    %21 = vector.shape_cast %20 : vector<1x1x8x256xf32> to vector<8x256xf32>
    %22 = vector.broadcast %15 : f32 to vector<8x256xf32>
    %23 = arith.subf %22, %16 : vector<8x256xf32>
    %24 = arith.mulf %21, %23 : vector<8x256xf32>
    %25 = arith.addf %16, %24 : vector<8x256xf32>
    %c0_3 = arith.constant 0 : index
    %c5_4 = arith.constant 5 : index
    %26 = arith.index_cast %18 : i32 to index
    %c0_5 = arith.constant 0 : index
    %27 = vector.load %arg3[%c0_3, %c5_4, %26, %c0_5] : memref<1x7x8x256xf32, #tpu.memory_space<vmem>>, vector<1x1x8x256xf32>
    %28 = vector.shape_cast %27 : vector<1x1x8x256xf32> to vector<8x256xf32>
    %29 = vector.broadcast %13 : f32 to vector<8x256xf32>
    %30 = arith.subf %29, %25 : vector<8x256xf32>
    %31 = arith.mulf %28, %30 : vector<8x256xf32>
    %32 = arith.addf %25, %31 : vector<8x256xf32>
    %c0_6 = arith.constant 0 : index
    %c4_7 = arith.constant 4 : index
    %33 = arith.index_cast %18 : i32 to index
    %c0_8 = arith.constant 0 : index
    %34 = vector.load %arg3[%c0_6, %c4_7, %33, %c0_8] : memref<1x7x8x256xf32, #tpu.memory_space<vmem>>, vector<1x1x8x256xf32>
    %35 = vector.shape_cast %34 : vector<1x1x8x256xf32> to vector<8x256xf32>
    %36 = vector.broadcast %11 : f32 to vector<8x256xf32>
    %37 = arith.subf %36, %32 : vector<8x256xf32>
    %38 = arith.mulf %35, %37 : vector<8x256xf32>
    %39 = arith.addf %32, %38 : vector<8x256xf32>
    %c0_9 = arith.constant 0 : index
    %c3_10 = arith.constant 3 : index
    %40 = arith.index_cast %18 : i32 to index
    %c0_11 = arith.constant 0 : index
    %41 = vector.load %arg3[%c0_9, %c3_10, %40, %c0_11] : memref<1x7x8x256xf32, #tpu.memory_space<vmem>>, vector<1x1x8x256xf32>
    %42 = vector.shape_cast %41 : vector<1x1x8x256xf32> to vector<8x256xf32>
    %43 = vector.broadcast %9 : f32 to vector<8x256xf32>
    %44 = arith.subf %43, %39 : vector<8x256xf32>
    %45 = arith.mulf %42, %44 : vector<8x256xf32>
    %46 = arith.addf %39, %45 : vector<8x256xf32>
    %c0_12 = arith.constant 0 : index
    %c2_13 = arith.constant 2 : index
    %47 = arith.index_cast %18 : i32 to index
    %c0_14 = arith.constant 0 : index
    %48 = vector.load %arg3[%c0_12, %c2_13, %47, %c0_14] : memref<1x7x8x256xf32, #tpu.memory_space<vmem>>, vector<1x1x8x256xf32>
    %49 = vector.shape_cast %48 : vector<1x1x8x256xf32> to vector<8x256xf32>
    %50 = vector.broadcast %7 : f32 to vector<8x256xf32>
    %51 = arith.subf %50, %46 : vector<8x256xf32>
    %52 = arith.mulf %49, %51 : vector<8x256xf32>
    %53 = arith.addf %46, %52 : vector<8x256xf32>
    %c0_15 = arith.constant 0 : index
    %c1_16 = arith.constant 1 : index
    %54 = arith.index_cast %18 : i32 to index
    %c0_17 = arith.constant 0 : index
    %55 = vector.load %arg3[%c0_15, %c1_16, %54, %c0_17] : memref<1x7x8x256xf32, #tpu.memory_space<vmem>>, vector<1x1x8x256xf32>
    %56 = vector.shape_cast %55 : vector<1x1x8x256xf32> to vector<8x256xf32>
    %57 = vector.broadcast %5 : f32 to vector<8x256xf32>
    %58 = arith.subf %57, %53 : vector<8x256xf32>
    %59 = arith.mulf %56, %58 : vector<8x256xf32>
    %60 = arith.addf %53, %59 : vector<8x256xf32>
    %c0_18 = arith.constant 0 : index
    %c0_19 = arith.constant 0 : index
    %61 = arith.index_cast %18 : i32 to index
    %c0_20 = arith.constant 0 : index
    %62 = vector.load %arg3[%c0_18, %c0_19, %61, %c0_20] : memref<1x7x8x256xf32, #tpu.memory_space<vmem>>, vector<1x1x8x256xf32>
    %63 = vector.shape_cast %62 : vector<1x1x8x256xf32> to vector<8x256xf32>
    %64 = vector.broadcast %3 : f32 to vector<8x256xf32>
    %65 = arith.subf %64, %60 : vector<8x256xf32>
    %66 = arith.mulf %63, %65 : vector<8x256xf32>
    %67 = arith.addf %60, %66 : vector<8x256xf32>
    %c0_21 = arith.constant 0 : index
    %68 = arith.index_cast %18 : i32 to index
    %c0_22 = arith.constant 0 : index
    %69 = vector.load %arg4[%c0_21, %68, %c0_22] : memref<1x8x256xf32, #tpu.memory_space<vmem>>, vector<1x8x256xf32>
    %70 = vector.shape_cast %69 : vector<1x8x256xf32> to vector<8x256xf32>
    %71 = vector.shape_cast %67 : vector<8x256xf32> to vector<1x8x256xf32>
    tpu.vector_store %arg4[%c0_21, %68, %c0_22], %71 {strides = array<i32>} : memref<1x8x256xf32, #tpu.memory_space<vmem>>, vector<1x8x256xf32>,
    %c1_i32 = arith.constant 1 : i32
    return
  }
  func.func @transform_0(%arg0: i32, %arg1: i32, %arg2: memref<2x8xf32, #tpu.memory_space<smem>>) -> (i32, i32, i32, i32) {
    %c0_i32 = arith.constant 0 : i32
    %c0_i32_0 = arith.constant 0 : i32
    %c0_i32_1 = arith.constant 0 : i32
    return %arg0, %c0_i32, %arg1, %c0_i32_0 : i32, i32, i32, i32
  }
  func.func @transform_1(%arg0: i32, %arg1: i32, %arg2: memref<2x8xf32, #tpu.memory_space<smem>>) -> (i32, i32, i32) {
    %c0_i32 = arith.constant 0 : i32
    %c0_i32_0 = arith.constant 0 : i32
    return %arg0, %arg1, %c0_i32 : i32, i32, i32
  }
}

</mosaic_0001>

<bundles_post_ra>
// kernel: tpu_custom_call.1
= control target key start
LH: loop header
LB: loop body
LE: loop exit
PB: predicated region body
PF: predicated region fallthrough
CT: control target
= control target key end

     0   :  { %s823_s0 = inlined_call_operand.hbm [shape: f32[2,8], index: 0, kind: input, shape index: {}]   ;;  %s824_s1 = inlined_call_operand.hbm [shape: f32[2,8,8,256], index: 1, kind: input, shape index: {}]   ;;  %s825_s2 = inlined_call_operand.hbm [shape: f32[2,8,256], index: 2, kind: output, shape index: {}]  }
   0x1   :  { %s464_s11 = scalar_lea.hbm %s823_s0, 32 }
   0x2   :  { %p465_p0 = scmp.ne.s32.totalorder %s823_s0, %s464_s11  ;;  %p468_p1 = scmp.lt.u32.totalorder %s464_s11, %s823_s0 }
   0x4   :  { %p470_p2 = pnand %p468_p1, %p465_p0 }
   0x6   :  { %473 = shalt.err (!%p470_p2)  }
   0x7   :  { %s590_s16 = smov [#allocation3]  }
   0x8   :  { %8 = dma.hbm_to_smem %s823_s0, 32, %s590_s16, [#allocation2] }
   0x9   :  { %556 = dma.done.wait [#allocation2], 32 }
   0xa   :  { %557 = vsyncadd [#allocation2], 4294967264 }
   0xb   :  { %10 = sfence }
   0xc   :  { %11 = vsyncpa [#allocation5], 0 }
   0xd   :  { %13 = vsyncpa [#allocation5 + $0x1], 0 }
   0xe   :  { %14 = vsyncpa [#allocation6], 0 }
   0xf   :  { %16 = vsyncpa [#allocation6 + $0x1], 0  ;;  %s622_s19 = smov 0   ;;  %s624_s20 = smov 0  }
  0x10   :  { %s626_s21 = smov 0   ;;  %s628_s22 = smov 0  }
  0x11   :  { %s630_s23 = smov 0   ;;  %s632_s24 = smov 0  }
  0x12 LB: > { %s369_s0 = sadd.s32 4294967295, %s588_s24   ;;  %s370_s25 = sadd.s32 4294967294, %s588_s24   ;;  %s588_s24 = sphi %s632_s24, %s22_s24   ;;  %s584_s23 = sphi %s630_s23, %s840_s23   ;;  %s580_s22 = sphi %s628_s22, %s839_s22   ;;  %s576_s21 = sphi %s626_s21, %s838_s21   ;;  %s572_s20 = sphi %s624_s20, %s837_s20   ;;  %s568_s19 = sphi %s622_s19, %s836_s19  }
  0x13   : > { %s34_s26 = sadd.s32 1, %s584_s23  ;;  %s43_s27 = sadd.s32 1, %s576_s21 }
  0x14   : > { %p36_p3 = scmp.ge.s32.totalorder %s34_s26, 2  ;;  %p50_p4 = scmp.ne.s32.totalorder %s576_s21, %s572_s20 }
  0x15   : > { %p51_p5 = scmp.eq.s32.totalorder %s588_s24, 0  ;;  %p56_p6 = scmp.ne.s32.totalorder %s572_s20, %s568_s19 }
  0x16   : > { %s842_s26 = smov (%p36_p3, %s34_s26), 0  ;;  %p57_p8 = scmp.eq.s32.totalorder %s369_s0, 0 }
  0x17   : > { %p663_p7 = por %p51_p5, %p50_p4  ;;  %s38_s29 = ssub.s32 %s584_s23, %s842_s26 }
  0x18   : > { %p82_p9 = scmp.eq.s32.totalorder %s369_s0, 1  ;;  %p41_p10 = scmp.eq.s32.totalorder %s38_s29, 0 }
  0x19   : > { %p669_p11 = por %p57_p8, %p56_p6  ;;  %p88_p13 = scmp.eq.s32.totalorder %s370_s25, 1 }
  0x1a   : > { %p673_p12 = por %p82_p9, %p50_p4  ;;  %p411_p2 = scmp.lt.s32.totalorder %s588_s24, 2 }
  0x1b   : > { %s678_s4 = scalar_select %p41_p10, %s576_s21, %s43_s27  }
  0x1c   : > { %s829_s3 = scalar_select %p673_p12, 1, 0 }
  0x1d   : > { %p680_p0 = por %p88_p13, %p56_p6  ;;  %s108_s6 = sand.u32 1, %s576_s21  }
  0x1e   : > { %s397_s7 = smul.u32 112, %s108_s6  ;;  %s395_s8 = sshll.u32 %s584_s23, 11 }
  0x1f   : > { %s830_s5 = scalar_select %p680_p0, 1, 0 }
  0x20   : > { %p690_p3 = pnand %p411_p2, %p663_p7  ;;  %s697_s12 = scalar_lea.hbm %s824_s1, %s395_s8 }
  0x21   : > { %s112_s13 = scalar_lea.vmem [#allocation4], %s397_s7  ;;  %s702_s15 = scalar_lea.sflag [#allocation5], %s108_s6 }
  0x22   : > { %s121_s14 = sshll.u32 %s112_s13, 4  ;;  %s474_s16 = scalar_lea.hbm %s697_s12, 1792  ;;  %s699_s14 = int_to_ptr.vmem [resolvable:$true] %s121_s14 }
  0x23   : > { %p475_p5 = scmp.ne.s32.totalorder %s697_s12, %s474_s16  ;;  %p476_p6 = pneg %p690_p3 }
  0x24   : > { %s479_s0 = scalar_lea.hbm %s824_s1, 4096  ;;  %p480_p9 = scmp.lt.u32.totalorder %s697_s12, %s824_s1 }
  0x25   : > { %p477_p7 = pnand %p476_p6, %p475_p5  ;;  %p481_p10 = scmp.lt.u32.totalorder %s479_s0, %s474_s16 }
  0x26   : > { %p483_p2 = scmp.lt.u32.totalorder %s474_s16, %s697_s12 }
  0x27   : > { %p478_p8 = pneg %p477_p7  ;;  %p482_p13 = por %p481_p10, %p480_p9 }
  0x29   : > { %p484_p1 = por %p483_p2, %p482_p13 }
  0x2b   : > { %p485_p4 = pnand %p484_p1, %p478_p8 }
  0x2d   : > { %488 = shalt.err (!%p485_p4)
}
  0x2e   : > { %s489_s28 = scalar_lea.vmem %s699_s14, 1792  ;;  %s591_s29 = smov [#allocation4]  }
  0x2f   : > { %p490_p5 = scmp.ne.s32.totalorder %s699_s14, %s489_s28  ;;  %s494_s6 = sshll.u32 %s591_s29, 4  ;;  %s495_s6 = int_to_ptr.vmem [resolvable:$false] %s494_s6 }
  0x30   : > { %s496_s7 = scalar_lea.vmem %s495_s6, 3584  ;;  %p497_p12 = scmp.lt.s32.totalorder %s699_s14, %s495_s6 }
  0x31   : > { %p492_p7 = pnand %p490_p5, %p476_p6  ;;  %p498_p9 = scmp.lt.s32.totalorder %s496_s7, %s489_s28 }
  0x33   : > { %p493_p0 = pneg %p492_p7  ;;  %p499_p10 = por %p498_p9, %p497_p12 }
  0x35   : > { %p500_p13 = pnand %p499_p10, %p493_p0 }
  0x37   : > { %503 = shalt.err (!%p500_p13)
}
  0x38   : > { %s592_s8 = smov 256   ;;  %s593_s10 = smov 16  }
  0x39   : > { %406 = dma.hbm_to_vmem [thread:$0]  (!%p690_p3), %s697_s12, 1792, %s699_s14, %s702_s15, %s592_s8, %s592_s8, %s593_s10  }
  0x3a   : > { %p129_p1 = scmp.lt.s32.totalorder %s588_s24, 3  ;;  %p832_p4 = scmp.ge.s32.totalorder %s588_s24, 1 }
  0x3c   : > { %p130_p6 = pnand %p832_p4, %p129_p1 }
  0x3d   : > { %s734_s11 = sand.u32 (!%p130_p6), 1, %s572_s20  }
  0x3e   : > { %133 = sbr.rel (%p130_p6) target bundleno = 136 (0x88), region = 24  ;;  %s136_s16 = scalar_lea.sflag (!%p130_p6), [#allocation5], %s734_s11 }
  0x3f   : > { %s398_s13 = smul.u32 (!%p130_p6), 112, %s734_s11 }
  0x41   : > { %s738_s17 = scalar_lea.vmem (!%p130_p6), [#allocation4], %s398_s13 }
  0x45   : > { %559 = dma.done.wait (%p669_p11), %s136_s16, 1792  }
  0x46   : > { %561 = vsyncadd (%p669_p11), %s136_s16, 4294965504  ;;  %s745_s9 = sshll.u32 %s580_s22, 7  ;;  %v378_v1 = vld [vmem:[%s738_s17 + $0x60] sm:$0xff]  ;;  %v379_v3 = vld [vmem:[%s738_s17 + $0x68] sm:$0xff]  ;;  %s376_s16 = sshll.u32 %s734_s11, 4 }
  0x47   : > { %s159_s12 = sadd.s32 7, %s745_s9  ;;  %s170_s15 = sadd.s32 5, %s745_s9  ;;  %v380_v10 = vld [vmem:[%s738_s17 + $0x50] sm:$0xff]  ;;  %v381_v11 = vld [vmem:[%s738_s17 + $0x58] sm:$0xff]  ;;  %v382_v19 = vld [vmem:[%s738_s17 + $0x40] sm:$0xff] }
  0x48   : > { %s160_s14 = sld [smem:[#allocation3 + %s159_s12]]  ;;  %s172_s18 = sadd.s32 6, %s745_s9  ;;  %v383_v20 = vld [vmem:[%s738_s17 + $0x48] sm:$0xff]  ;;  %v384_v28 = vld [vmem:[%s738_s17 + $0x30] sm:$0xff]  ;;  %v385_v29 = vld [vmem:[%s738_s17 + $0x38] sm:$0xff] }
  0x49   : > { %s173_s0 = sld [smem:[#allocation3 + %s172_s18]]  ;;  %s168_s30 = sadd.s32 4, %s745_s9  ;;  %v386_v37 = vld [vmem:[%s738_s17 + $0x20] sm:$0xff]  ;;  %v387_v38 = vld [vmem:[%s738_s17 + $0x28] sm:$0xff]  ;;  %v388_v46 = vld [vmem:[%s738_s17 + $0x10] sm:$0xff] }
  0x4a   : > { %s171_s25 = sld [smem:[#allocation3 + %s170_s15]]  ;;  %s166_s28 = sadd.s32 3, %s745_s9  ;;  %v389_v47 = vld [vmem:[%s738_s17 + $0x18] sm:$0xff]  ;;  %v249_v55 = vld [vmem:[%s738_s17] sm:$0xff]  ;;  %v250_v56 = vld [vmem:[%s738_s17 + $0x8] sm:$0xff] }
  0x4b   : > { %s169_s27 = sld [smem:[#allocation3 + %s168_s30]]  ;;  %s164_s6 = sadd.s32 2, %s745_s9 }
  0x4c   : > { %s167_s29 = sld [smem:[#allocation3 + %s166_s28]]  ;;  %s162_s8 = sadd.s32 1, %s745_s9 }
  0x4d   : > { %s165_s7 = sld [smem:[#allocation3 + %s164_s6]]  ;;  %s263_s17 = scalar_lea.sflag [#allocation6], %s734_s11 }
  0x4e   : > { %v174_v0 = vstv %s160_s14  ;;  %s163_s10 = sld [smem:[#allocation3 + %s162_s8]]  ;;  %s396_s14 = sshll.u32 %s580_s22, 8 }
  0x4f   : > { %v181_v2 = vstv %s173_s0  ;;  %s161_s13 = sld [smem:[#allocation3 + %s745_s9]]  ;;  %s157_s9 = scalar_lea.vmem [#allocation7], %s376_s16 }
  0x50   : > { %v182_v4 = vsub.f32 %v181_v2, %v174_v0  ;;  %v192_v7 = vstv %s171_s25  ;;  %s279_s12 = sshll.u32 %s157_s9, 4  ;;  %s776_s0 = scalar_lea.hbm %s825_s2, %s396_s14  ;;  %s771_s12 = int_to_ptr.vmem [resolvable:$true] %s279_s12 }
  0x51   : > { %v204_v16 = vstv %s169_s27  ;;  %s504_s25 = scalar_lea.vmem %s771_s12, 256  ;;  %p833_p12 = scmp.ne.s32.totalorder %s829_s3, 0 }
  0x52   : > { %v183_v5 = vmul.f32 %v378_v1, %v182_v4  ;;  %v184_v6 = vmul.f32 %v379_v3, %v182_v4  ;;  %v216_v25 = vstv %s167_s29  ;;  %p505_p11 = scmp.ne.s32.totalorder %s771_s12, %s504_s25  ;;  %s594_s22 = smov [#allocation7]  }
  0x53   : > { %v228_v34 = vstv %s165_s7  ;;  %s508_s30 = sshll.u32 %s594_s22, 4  ;;  %s509_s30 = int_to_ptr.vmem [resolvable:$false] %s508_s30 }
  0x54   : > { %v185_v8 = vadd.f32 %v183_v5, %v174_v0  ;;  %v186_v9 = vadd.f32 %v184_v6, %v174_v0  ;;  %v240_v43 = vstv %s163_s10  ;;  %p506_p0 = pnand %p505_p11, %p833_p12  ;;  %s510_s27 = scalar_lea.vmem %s509_s30, 512 }
  0x55   : > { %v251_v52 = vstv %s161_s13  ;;  %p511_p8 = scmp.lt.s32.totalorder %s771_s12, %s509_s30  ;;  %p512_p2 = scmp.lt.s32.totalorder %s510_s27, %s504_s25 }
  0x56   : > { %v193_v12 = vsub.f32 %v192_v7, %v185_v8  ;;  %v194_v13 = vsub.f32 %v192_v7, %v186_v9  ;;  %p507_p3 = pneg %p506_p0 }
  0x57   : > { %p513_p5 = por %p512_p2, %p511_p8 }
  0x58   : > { %v195_v14 = vmul.f32 %v380_v10, %v193_v12  ;;  %v196_v15 = vmul.f32 %v381_v11, %v194_v13 }
  0x59   : > { %p514_p7 = pnand %p513_p5, %p507_p3 }
  0x5a   : > { %v197_v17 = vadd.f32 %v195_v14, %v185_v8  ;;  %v198_v18 = vadd.f32 %v196_v15, %v186_v9 }
  0x5c   : > { %v205_v21 = vsub.f32 %v204_v16, %v197_v17  ;;  %v206_v22 = vsub.f32 %v204_v16, %v198_v18 }
  0x5e   : > { %v207_v23 = vmul.f32 %v382_v19, %v205_v21  ;;  %v208_v24 = vmul.f32 %v383_v20, %v206_v22 }
  0x60   : > { %v209_v26 = vadd.f32 %v207_v23, %v197_v17  ;;  %v210_v27 = vadd.f32 %v208_v24, %v198_v18 }
  0x62   : > { %v217_v30 = vsub.f32 %v216_v25, %v209_v26  ;;  %v218_v31 = vsub.f32 %v216_v25, %v210_v27 }
  0x64   : > { %v219_v32 = vmul.f32 %v384_v28, %v217_v30  ;;  %v220_v33 = vmul.f32 %v385_v29, %v218_v31 }
  0x66   : > { %v221_v35 = vadd.f32 %v219_v32, %v209_v26  ;;  %v222_v36 = vadd.f32 %v220_v33, %v210_v27 }
  0x68   : > { %v229_v39 = vsub.f32 %v228_v34, %v221_v35  ;;  %v230_v40 = vsub.f32 %v228_v34, %v222_v36 }
  0x6a   : > { %v231_v41 = vmul.f32 %v386_v37, %v229_v39  ;;  %v232_v42 = vmul.f32 %v387_v38, %v230_v40 }
  0x6c   : > { %v233_v44 = vadd.f32 %v231_v41, %v221_v35  ;;  %v234_v45 = vadd.f32 %v232_v42, %v222_v36 }
  0x6e   : > { %v241_v48 = vsub.f32 %v240_v43, %v233_v44  ;;  %v242_v49 = vsub.f32 %v240_v43, %v234_v45 }
  0x70   : > { %v243_v50 = vmul.f32 %v388_v46, %v241_v48  ;;  %v244_v51 = vmul.f32 %v389_v47, %v242_v49 }
  0x72   : > { %v245_v53 = vadd.f32 %v243_v50, %v233_v44  ;;  %v246_v54 = vadd.f32 %v244_v51, %v234_v45 }
  0x74   : > { %v252_v57 = vsub.f32 %v251_v52, %v245_v53  ;;  %v253_v58 = vsub.f32 %v251_v52, %v246_v54 }
  0x76   : > { %v254_v59 = vmul.f32 %v252_v57, %v249_v55  ;;  %v255_v60 = vmul.f32 %v253_v58, %v250_v56 }
  0x78   : > { %v256_v61 = vadd.f32 %v254_v59, %v245_v53  ;;  %v257_v62 = vadd.f32 %v255_v60, %v246_v54 }
  0x7a   : > { %260 = vst [vmem:[%s157_s9] sm:$0xff] %v256_v61  ;;  %261 = vst [vmem:[%s157_s9 + $0x8] sm:$0xff] %v257_v62 }
  0x7b   : > { %517 = shalt.err (!%p514_p7)
}
  0x7c   : > { %s518_s11 = scalar_lea.hbm %s776_s0, 256  ;;  %s522_s6 = scalar_lea.hbm %s825_s2, 512 }
  0x7d   : > { %p519_p9 = scmp.ne.s32.totalorder %s776_s0, %s518_s11  ;;  %p523_p1 = scmp.lt.u32.totalorder %s776_s0, %s825_s2 }
  0x7e   : > { %p524_p4 = scmp.lt.u32.totalorder %s522_s6, %s518_s11  ;;  %p526_p11 = scmp.lt.u32.totalorder %s518_s11, %s776_s0 }
  0x7f   : > { %p520_p10 = pnand %p519_p9, %p833_p12 }
  0x80   : > { %p525_p6 = por %p524_p4, %p523_p1 }
  0x81   : > { %p521_p13 = pneg %p520_p10 }
  0x82   : > { %p527_p0 = por %p526_p11, %p525_p6 }
  0x84   : > { %p528_p3 = pnand %p527_p0, %p521_p13 }
  0x86   : > { %531 = shalt.err (!%p528_p3)
}
  0x87   : > { %401 = dma.vmem_to_hbm [thread:$0]  (%p833_p12), %s771_s12, 256, %s776_s0, %s263_s17  }
  0x88 PF: > { %s291_s10 = sand.u32 1, %s568_s19   ;;  %p834_p8 = scmp.ne.s32.totalorder %s830_s5, 0 }
  0x89   : > { %p835_p2 = scmp.ge.s32.totalorder %s588_s24, 2  ;;  %s292_s13 = scalar_lea.sflag [#allocation6], %s291_s10 }
  0x8b   : > { %p408_p5 = pnand %p835_p2, %p834_p8 }
  0x8d   : > { %563 = dma.done.wait (!%p408_p5), %s292_s13, 256  }
  0x8e   : > { %565 = vsyncadd (!%p408_p5), %s292_s13, 4294967040  ;;  %s22_s24 = sadd.s32 1, %s588_s24   ;;  %s836_s19 = smov %s572_s20 }
  0x8f   : > { %p19_p7 = scmp.ge.s32.totalorder %s22_s24, 4   ;;  %s837_s20 = smov %s576_s21 }
  0x90   : > { %s838_s21 = smov %s678_s4  ;;  %s839_s22 = smov %s584_s23 }
  0x91   : > { %s840_s23 = smov %s842_s26  ;;  %21 = sbr.rel (!%p19_p7) target bundleno = 18 (0x12), region = 77 }
  0x98   :  { %297 = vsyncpa [#allocation5], 1 }
  0x99   :  { %299 = vsyncpa [#allocation5 + $0x1], 1 }
  0x9a   :  { %300 = vsyncpa [#allocation6], 1 }
  0x9b   :  { %302 = vsyncpa [#allocation6 + $0x1], 1 }

</bundles_post_ra>
